<compile_context>
chip_gen: v6e
topology: v6e:2x2x1
jax: 0.10.0
libtpu: 0.0.40
codegen_flags: <defaults>
</compile_context>

<pallas_src>
import jax
import jax.numpy as jnp
from jax import lax
from jax.experimental import pallas as pl
from jax.experimental.pallas import tpu as pltpu


def _round_up(x, m):
    return ((x + m - 1) // m) * m


def _pick_tile(dim, tmax):
    """Largest multiple of 128 <= tmax that divides round_up(dim, 128)."""
    d128 = _round_up(dim, 128)
    if d128 <= tmax:
        return d128
    t = (tmax // 128) * 128
    while t > 128:
        if d128 % t == 0:
            return t
        t -= 128
    return 128


def _tpu_vmem_capacity_bytes():
    try:
        info = pltpu.get_tpu_info()
        cap = getattr(info, "vmem_capacity_bytes", None)
        if cap is not None:
            return int(cap)
    except Exception:
        pass
    return None


def _make_kernel(cast_to_bf16):
    in_dtype = jnp.bfloat16 if cast_to_bf16 else None

    def kernel(x1_ref, x2_ref, o_ref, acc_ref):
        # x1_ref: (tk, tm) slab of x1[b]   (rows = contraction K, cols = out M)
        # x2_ref: (tn, tk) slab of x2[b]   (rows = out N, cols = contraction K)
        # acc_ref: (tn, tm) f32 accumulator holding out_tile^T.
        k = pl.program_id(3)

        @pl.when(k == 0)
        def _():
            acc_ref[...] = jnp.zeros_like(acc_ref)

        lhs = x2_ref[...]
        rhs = x1_ref[...]
        if in_dtype is not None:
            lhs = lhs.astype(in_dtype)
            rhs = rhs.astype(in_dtype)

        # Canonical A[M,K] @ B[K,N] orientation for the MXU.
        acc_ref[...] += jnp.dot(lhs, rhs, preferred_element_type=jnp.float32)

        @pl.when(k == pl.num_programs(3) - 1)
        def _():
            # Single epilogue transpose (XLU), amortized over all K steps.
            o_ref[...] = acc_ref[...].T.astype(o_ref.dtype)

    return kernel


def permuted_matmul(x1, x2, *, tm_max=None, tn_max=None, tk_max=None,
                    bf16_inputs=False, force_pallas=False):
    """out[b] = x1[b].T @ x2[b].T (batched), matching the torch module."""
    B, A, C = x1.shape          # x1: (B, K, M)
    B2, A2, C2 = x2.shape       # x2: (B, N, K)
    assert B == B2 and A == C2, "matmul contraction dim mismatch"
    K, M, N = A, C, A2

    # Tiny-problem fast path: padding a 2x2x2 matmul to 128-tiles is >1e5x
    # wasted MXU work plus launch overhead; let XLA handle it directly.
    if not force_pallas and (B * M * N * K) < 8192:
        return jnp.einsum("bkm,bnk->bmn", x1, x2)

    cap = _tpu_vmem_capacity_bytes()
    big_vmem = cap is not None and cap >= 100 * (1 << 20)   # v5e / v6e (128 MiB)
    if tm_max is None:
        tm_max = 512
    if tn_max is None:
        tn_max = 1024 if big_vmem else 512
    if tk_max is None:
        tk_max = 512
    vmem_limit = (96 if big_vmem else 48) * (1 << 20)

    tm = _pick_tile(M, tm_max)
    tn = _pick_tile(N, tn_max)
    tk = _pick_tile(K, tk_max)

    Mp = _round_up(M, tm)
    Np = _round_up(N, tn)
    Kp = _round_up(K, tk)

    # Pad only to lane/sublane-aligned tile multiples (zero K-padding is exact
    # for the contraction; extra M/N rows/cols are sliced off below).
    x1p = x1 if (Kp == K and Mp == M) else jnp.pad(x1, ((0, 0), (0, Kp - K), (0, Mp - M)))
    x2p = x2 if (Np == N and Kp == K) else jnp.pad(x2, ((0, 0), (0, Np - N), (0, Kp - K)))

    grid = (B, Mp // tm, Np // tn, Kp // tk)

    # HBM traffic including tiling reload factors (advisory for XLA scheduling).
    bytes_x1 = 4 * B * Kp * Mp * (Np // tn)
    bytes_x2 = 4 * B * Np * Kp * (Mp // tm)
    bytes_out = 4 * B * Mp * Np
    cost = pl.CostEstimate(
        flops=2 * B * Mp * Np * Kp,
        transcendentals=0,
        bytes_accessed=bytes_x1 + bytes_x2 + bytes_out,
    )

    out_p = pl.pallas_call(
        _make_kernel(bf16_inputs),
        out_shape=jax.ShapeDtypeStruct((B, Mp, Np), jnp.float32),
        grid_spec=pltpu.PrefetchScalarGridSpec(
            num_scalar_prefetch=0,
            grid=grid,
            in_specs=[
                # x1[b] tile: rows = K-block k, cols = M-block i
                pl.BlockSpec((pl.Squeezed(), tk, tm),
                             lambda b, i, j, k: (b, k, i)),
                # x2[b] tile: rows = N-block j, cols = K-block k
                pl.BlockSpec((pl.Squeezed(), tn, tk),
                             lambda b, i, j, k: (b, j, k)),
            ],
            out_specs=pl.BlockSpec((pl.Squeezed(), tm, tn),
                                   lambda b, i, j, k: (b, i, j)),
            # Transposed accumulator: holds out_tile^T in canonical MXU layout.
            scratch_shapes=[pltpu.VMEM((tn, tm), jnp.float32)],
        ),
        compiler_params=pltpu.CompilerParams(
            dimension_semantics=("parallel", "parallel", "parallel", "arbitrary"),
            vmem_limit_bytes=int(vmem_limit),
        ),
        cost_estimate=cost,
    )(x1p, x2p)

    if Mp != M or Np != N:
        out_p = out_p[:, :M, :N]
    return out_p


def _reference(x1, x2):
    # High-precision reference for the same semantics as the torch module.
    return jnp.einsum("bkm,bnk->bmn", x1, x2, precision=lax.Precision.HIGHEST)


def _check(out, ref, tol):
    err = jnp.max(jnp.abs(out - ref)) / (jnp.max(jnp.abs(ref)) + 1e-12)
    assert out.shape == ref.shape, (out.shape, ref.shape)
    assert float(err) < tol, float(err)


if __name__ == "__main__":
    key = jax.random.PRNGKey(0)
    k1, k2, k3, k4, k5, k6 = jax.random.split(key, 6)

    # 1) Exact module spec (1,2,2) x (1,2,2): tiny-shape fast path.
    a1 = jax.random.normal(k1, (1, 2, 2), dtype=jnp.float32)
    a2 = jax.random.normal(k2, (1, 2, 2), dtype=jnp.float32)
    out_a = jax.block_until_ready(permuted_matmul(a1, a2))
    _check(out_a, _reference(a1, a2), 1e-3)

    # 2) Small batched shapes through the Pallas kernel (alignment-padding path).
    B, K, M, N = 2, 8, 16, 32
    b1 = jax.random.normal(k3, (B, K, M), dtype=jnp.float32)   # (B, A, C)
    b2 = jax.random.normal(k4, (B, N, K), dtype=jnp.float32)   # (B, A2, C2=A)
    out_b = jax.block_until_ready(permuted_matmul(b1, b2, force_pallas=True))
    _check(out_b, _reference(b1, b2), 1e-3)

    # 3) Multi-block grid: M/N/K all tiled -> K accumulation + epilogue transpose.
    B, K, M, N = 2, 384, 256, 320
    c1 = jax.random.normal(k5, (B, K, M), dtype=jnp.float32)
    c2 = jax.random.normal(k6, (B, N, K), dtype=jnp.float32)
    out_c = jax.block_until_ready(
        permuted_matmul(c1, c2, tm_max=128, tn_max=128, tk_max=128))
    _check(out_c, _reference(c1, c2), 1e-3)

    print("KERNEL_OK")
</pallas_src>

<mosaic_0001>
module attributes {stable_mosaic.version = 11 : i64} {
  func.func @kernel(%arg0: i32, %arg1: i32, %arg2: i32, %arg3: i32, %arg4: memref<1x128x128xf32, #tpu.memory_space<vmem>>, %arg5: memref<1x128x128xf32, #tpu.memory_space<vmem>>, %arg6: memref<1x128x128xf32, #tpu.memory_space<vmem>>, %arg7: memref<128x128xf32, #tpu.memory_space<vmem>>) attributes {dimension_semantics = [#tpu.dimension_semantics<parallel>, #tpu.dimension_semantics<parallel>, #tpu.dimension_semantics<parallel>, #tpu.dimension_semantics<arbitrary>], iteration_bounds = array<i64: 2, 1, 1, 1>, scalar_prefetch = 0 : i64, scratch_operands = 1 : i64, tpu.core_type = #tpu.core_type<tc>, window_params = [{transform_indices = @transform_0, window_bounds = array<i64: 1, 128, 128>}, {transform_indices = @transform_1, window_bounds = array<i64: 1, 128, 128>}, {transform_indices = @transform_2, window_bounds = array<i64: 1, 128, 128>}]} {
    %c0_i32 = arith.constant 0 : i32
    %0 = arith.cmpi eq, %arg3, %c0_i32 : i32
    %1 = arith.extui %0 : i1 to i32
    %c0_i32_0 = arith.constant 0 : i32
    %2 = arith.cmpi ne, %1, %c0_i32_0 : i32
    scf.if %2 {
      %cst_12 = arith.constant 0.000000e+00 : f32
      %14 = vector.broadcast %cst_12 : f32 to vector<128x128xf32>
      %c0_13 = arith.constant 0 : index
      %c0_14 = arith.constant 0 : index
      %15 = vector.load %arg7[%c0_13, %c0_14] : memref<128x128xf32, #tpu.memory_space<vmem>>, vector<128x128xf32>
      tpu.vector_store %arg7[%c0_13, %c0_14], %14 {strides = array<i32>} : memref<128x128xf32, #tpu.memory_space<vmem>>, vector<128x128xf32>,
    } else {
    }
    %c0 = arith.constant 0 : index
    %c0_1 = arith.constant 0 : index
    %c0_2 = arith.constant 0 : index
    %3 = vector.load %arg5[%c0, %c0_1, %c0_2] : memref<1x128x128xf32, #tpu.memory_space<vmem>>, vector<1x128x128xf32>
    %4 = vector.shape_cast %3 : vector<1x128x128xf32> to vector<128x128xf32>
    %c0_3 = arith.constant 0 : index
    %c0_4 = arith.constant 0 : index
    %c0_5 = arith.constant 0 : index
    %5 = vector.load %arg4[%c0_3, %c0_4, %c0_5] : memref<1x128x128xf32, #tpu.memory_space<vmem>>, vector<1x128x128xf32>
    %6 = vector.shape_cast %5 : vector<1x128x128xf32> to vector<128x128xf32>
    %c0_6 = arith.constant 0 : index
    %c0_7 = arith.constant 0 : index
    %7 = vector.load %arg7[%c0_6, %c0_7] : memref<128x128xf32, #tpu.memory_space<vmem>>, vector<128x128xf32>
    %cst = arith.constant dense<0.000000e+00> : vector<128x128xf32>
    %8 = tpu.matmul %4, %6, %cst {dimension_numbers = #tpu.dot_dimension_numbers<[1], [0], [0], [1], [0, 0, 1, 1], [], []>} : vector<128x128xf32>, vector<128x128xf32>, vector<128x128xf32> -> vector<128x128xf32>
    %9 = arith.addf %7, %8 : vector<128x128xf32>
    %c0_8 = arith.constant 0 : index
    %c0_9 = arith.constant 0 : index
    %10 = vector.load %arg7[%c0_8, %c0_9] : memref<128x128xf32, #tpu.memory_space<vmem>>, vector<128x128xf32>
    tpu.vector_store %arg7[%c0_8, %c0_9], %9 {strides = array<i32>} : memref<128x128xf32, #tpu.memory_space<vmem>>, vector<128x128xf32>,
    %c0_i32_10 = arith.constant 0 : i32
    %11 = arith.cmpi eq, %arg3, %c0_i32_10 : i32
    %12 = arith.extui %11 : i1 to i32
    %c0_i32_11 = arith.constant 0 : i32
    %13 = arith.cmpi ne, %12, %c0_i32_11 : i32
    scf.if %13 {
      %c0_12 = arith.constant 0 : index
      %c0_13 = arith.constant 0 : index
      %14 = vector.load %arg7[%c0_12, %c0_13] : memref<128x128xf32, #tpu.memory_space<vmem>>, vector<128x128xf32>
      %15 = tpu.transpose %14, [1, 0] : vector<128x128xf32> -> vector<128x128xf32>
      %c0_14 = arith.constant 0 : index
      %c0_15 = arith.constant 0 : index
      %c0_16 = arith.constant 0 : index
      %16 = vector.load %arg6[%c0_14, %c0_15, %c0_16] : memref<1x128x128xf32, #tpu.memory_space<vmem>>, vector<1x128x128xf32>
      %17 = vector.shape_cast %16 : vector<1x128x128xf32> to vector<128x128xf32>
      %18 = vector.shape_cast %15 : vector<128x128xf32> to vector<1x128x128xf32>
      tpu.vector_store %arg6[%c0_14, %c0_15, %c0_16], %18 {strides = array<i32>} : memref<1x128x128xf32, #tpu.memory_space<vmem>>, vector<1x128x128xf32>,
    } else {
    }
    return
  }
  func.func @transform_0(%arg0: i32, %arg1: i32, %arg2: i32, %arg3: i32) -> (i32, i32, i32) {
    %c0_i32 = arith.constant 0 : i32
    return %arg0, %arg3, %arg1 : i32, i32, i32
  }
  func.func @transform_1(%arg0: i32, %arg1: i32, %arg2: i32, %arg3: i32) -> (i32, i32, i32) {
    %c0_i32 = arith.constant 0 : i32
    return %arg0, %arg2, %arg3 : i32, i32, i32
  }
  func.func @transform_2(%arg0: i32, %arg1: i32, %arg2: i32, %arg3: i32) -> (i32, i32, i32) {
    %c0_i32 = arith.constant 0 : i32
    return %arg0, %arg1, %arg2 : i32, i32, i32
  }
}

</mosaic_0001>

<bundles_post_ra>
// kernel: tpu_custom_call.1
= control target key start
LH: loop header
LB: loop body
LE: loop exit
PB: predicated region body
PF: predicated region fallthrough
CT: control target
= control target key end

     0   :  { %7 = vsyncpa [#allocation4], 0  ;;  %s1318_s0 = inlined_call_operand.hbm [shape: f32[2,128,128], index: 0, kind: input, shape index: {}]   ;;  %s1319_s1 = inlined_call_operand.hbm [shape: f32[2,128,128], index: 1, kind: input, shape index: {}]   ;;  %s1320_s2 = inlined_call_operand.hbm [shape: f32[2,128,128], index: 2, kind: output, shape index: {}]  }
   0x1   :  { %9 = vsyncpa [#allocation4 + $0x1], 0 }
   0x2   :  { %10 = vsyncpa [#allocation7], 0 }
   0x3   :  { %12 = vsyncpa [#allocation7 + $0x1], 0 }
   0x4   :  { %13 = vsyncpa [#allocation5], 0 }
   0x5   :  { %15 = vsyncpa [#allocation5 + $0x1], 0  ;;  %s1077_s9 = smov 0   ;;  %s1079_s10 = smov 0  }
   0x6   :  { %s1081_s11 = smov 0   ;;  %s1083_s12 = smov 0  }
   0x7   :  { %s1085_s13 = smov 0   ;;  %s1087_s14 = smov 0  }
   0x8 LB: > { %s700_s15 = sadd.s32 4294967295, %s1053_s14   ;;  %s701_s16 = sadd.s32 4294967294, %s1053_s14   ;;  %s1053_s14 = sphi %s1087_s14, %s21_s14   ;;  %s1049_s13 = sphi %s1085_s13, %s1331_s13   ;;  %s1045_s12 = sphi %s1083_s12, %s1330_s12   ;;  %s1041_s11 = sphi %s1081_s11, %s1329_s11   ;;  %s1037_s10 = sphi %s1079_s10, %s1328_s10   ;;  %s1033_s9 = sphi %s1077_s9, %s1327_s9  }
   0x9   : > { %s47_s17 = sadd.s32 1, %s1049_s13  ;;  %s58_s18 = sadd.s32 1, %s1041_s11 }
   0xa   : > { %p49_p0 = scmp.ge.s32.totalorder %s47_s17, 2  ;;  %p65_p1 = scmp.ne.s32.totalorder %s1041_s11, %s1037_s10 }
   0xb   : > { %p66_p2 = scmp.eq.s32.totalorder %s1053_s14, 0  ;;  %p71_p3 = scmp.ne.s32.totalorder %s1037_s10, %s1033_s9 }
   0xc   : > { %s1333_s17 = smov (%p49_p0, %s47_s17), 0  ;;  %p72_p5 = scmp.eq.s32.totalorder %s700_s15, 0 }
   0xd   : > { %p1118_p4 = por %p66_p2, %p65_p1  ;;  %s51_s20 = ssub.s32 %s1049_s13, %s1333_s17 }
   0xe   : > { %p129_p6 = scmp.eq.s32.totalorder %s700_s15, 1  ;;  %p56_p7 = scmp.eq.s32.totalorder %s51_s20, 0 }
   0xf   : > { %p1124_p8 = por %p72_p5, %p71_p3  ;;  %p135_p10 = scmp.eq.s32.totalorder %s701_s16, 1 }
  0x10   : > { %p1128_p9 = por %p129_p6, %p65_p1  ;;  %p703_p12 = scmp.ge.s32.totalorder %s1053_s14, 2 }
  0x11   : > { %s1133_s23 = scalar_select %p56_p7, %s1041_s11, %s58_s18  }
  0x12   : > { %p1135_p11 = por %p135_p10, %p71_p3  ;;  %p859_p13 = scmp.lt.s32.totalorder %s1053_s14, 2 }
  0x13   : > { %s1142_s25 = sand.u32 1, %s1041_s11   ;;  %s719_s27 = sshll.u32 %s1049_s13, 11 }
  0x14   : > { %s704_s26 = sshll.u32 %s1142_s25, 7  ;;  %s168_s30 = scalar_lea.hbm %s1318_s0, %s719_s27 }
  0x15   : > { %s159_s3 = scalar_lea.vmem [#allocation3], %s704_s26  ;;  %p1155_p0 = pnand %p859_p13, %p1118_p4 }
  0x16   : > { %s169_s4 = sshll.u32 %s159_s3, 4  ;;  %p710_p1 = scmp.ge.s32.totalorder %s1053_s14, 1  ;;  %s170_s4 = int_to_ptr.vmem [resolvable:$true] %s169_s4 }
  0x17   : > { %s156_s6 = scalar_lea.sflag [#allocation4], %s1142_s25  ;;  %p915_p2 = pneg %p1155_p0 }
  0x18   : > { %s926_s7 = scalar_lea.vmem %s170_s4, 2048  ;;  %s1055_s8 = smov [#allocation3]  }
  0x19   : > { %p927_p3 = scmp.ne.s32.totalorder %s170_s4, %s926_s7  ;;  %s931_s15 = sshll.u32 %s1055_s8, 4  ;;  %s932_s15 = int_to_ptr.vmem [resolvable:$false] %s931_s15 }
  0x1a   : > { %s933_s16 = scalar_lea.vmem %s932_s15, 4096  ;;  %p934_p4 = scmp.lt.s32.totalorder %s170_s4, %s932_s15 }
  0x1b   : > { %p929_p5 = pnand %p927_p3, %p915_p2  ;;  %p935_p7 = scmp.lt.s32.totalorder %s933_s16, %s926_s7 }
  0x1d   : > { %p930_p6 = pneg %p929_p5  ;;  %p936_p10 = por %p935_p7, %p934_p4 }
  0x1f   : > { %p937_p13 = pnand %p936_p10, %p930_p6 }
  0x21   : > { %940 = shalt.err (!%p937_p13)
}
  0x22   : > { %s1056_s18 = smov 128   ;;  %s1057_s19 = smov 8  }
  0x23   : > { %851 = dma.hbm_to_vmem [thread:$0]  (!%p1155_p0), %s168_s30, 2048, %s170_s4, %s156_s6, %s1056_s18, %s1056_s18, %s1057_s19  }
  0x24   : > { %p201_p3 = scmp.lt.s32.totalorder %s1053_s14, 3  ;;  %s192_s29 = scalar_lea.hbm %s1319_s1, %s719_s27 }
  0x25   : > { %s183_s7 = scalar_lea.vmem [#allocation6], %s704_s26  ;;  %s180_s15 = scalar_lea.sflag [#allocation7], %s1142_s25 }
  0x26   : > { %p1176_p5 = pnand %p710_p1, %p201_p3  ;;  %s193_s8 = sshll.u32 %s183_s7, 4  ;;  %s194_s8 = int_to_ptr.vmem [resolvable:$true] %s193_s8 }
  0x27   : > { %s954_s16 = scalar_lea.vmem %s194_s8, 2048  ;;  %s1058_s30 = smov [#allocation6]  }
  0x28   : > { %p955_p6 = scmp.ne.s32.totalorder %s194_s8, %s954_s16  ;;  %s959_s4 = sshll.u32 %s1058_s30, 4  ;;  %s960_s4 = int_to_ptr.vmem [resolvable:$false] %s959_s4 }
  0x29   : > { %s961_s27 = scalar_lea.vmem %s960_s4, 4096  ;;  %p962_p10 = scmp.lt.s32.totalorder %s194_s8, %s960_s4 }
  0x2a   : > { %p957_p4 = pnand %p955_p6, %p915_p2  ;;  %p963_p1 = scmp.lt.s32.totalorder %s961_s27, %s954_s16 }
  0x2c   : > { %p958_p7 = pneg %p957_p4  ;;  %p964_p13 = por %p963_p1, %p962_p10 }
  0x2e   : > { %p965_p3 = pnand %p964_p13, %p958_p7 }
  0x30   : > { %968 = shalt.err (!%p965_p3)
}
  0x31   : > { %854 = dma.hbm_to_vmem [thread:$0]  (!%p1155_p0), %s192_s29, 2048, %s194_s8, %s180_s15, %s1056_s18, %s1056_s18, %s1057_s19  }
  0x32   : > { %205 = sbr.rel (%p1176_p5) target bundleno = 485 (0x1e5), region = 28  ;;  %s1191_s25 = sand.u32 (!%p1176_p5), 1, %s1037_s10  }
  0x33   : > { %s1194_s26 = sshll.u32 (!%p1176_p5), %s1191_s25, 7  ;;  %s208_s6 = scalar_lea.sflag (!%p1176_p5), [#allocation4], %s1191_s25 }
  0x34   : > { %s1198_s20 = scalar_lea.vmem (!%p1176_p5), [#allocation3], %s1194_s26 }
  0x37   : > { %1020 = dma.done.wait (%p1124_p8), %s208_s6, 2048  }
  0x38   : > { %1022 = vsyncadd (%p1124_p8), %s208_s6, 4294965248  ;;  %s217_s5 = scalar_lea.sflag [#allocation7], %s1191_s25  ;;  %s1206_s18 = scalar_lea.vmem [#allocation6], %s1194_s26 }
  0x39   : > { %1024 = dma.done.wait (%p1124_p8), %s217_s5, 2048  }
  0x3a   : > { %1026 = vsyncadd (%p1124_p8), %s217_s5, 4294965248  ;;  %v300_v0 = vld [vmem:[%s1198_s20 + $0x78] sm:$0xff]  ;;  %v299_v1 = vld [vmem:[%s1198_s20 + $0x70] sm:$0xff]  ;;  %s1245_s21 = scalar_lea.vmem [#allocation8], %s1194_s26  ;;  %s721_s19 = sshll.u32 %s1045_s12, 11 }
  0x3b   : > { %754 = vmatprep.subr.mxu0 %v300_v0  ;;  %810 = vmatprep.subr.mxu1 %v300_v0  ;;  %v298_v2 = vld [vmem:[%s1198_s20 + $0x68] sm:$0xff]  ;;  %v297_v3 = vld [vmem:[%s1198_s20 + $0x60] sm:$0xff]  ;;  %v296_v5 = vld [vmem:[%s1198_s20 + $0x58] sm:$0xff]  ;;  %s578_s28 = sshll.u32 %s1245_s21, 4  ;;  %s1267_s7 = scalar_lea.hbm %s1320_s2, %s721_s19  ;;  %s1269_s28 = int_to_ptr.vmem [resolvable:$true] %s578_s28 }
  0x3c   : > { %755 = vmatpush3.msra.mxu0 %v300_v0  ;;  %826 = vmatpush3.msra.mxu1 %v300_v0  ;;  %v269_v4 = vld [vmem:[%s1206_s18] sm:$0xff]  ;;  %v295_v6 = vld [vmem:[%s1198_s20 + $0x50] sm:$0xff]  ;;  %v294_v7 = vld [vmem:[%s1198_s20 + $0x48] sm:$0xff]  ;;  %s562_s8 = scalar_lea.sflag [#allocation5], %s1191_s25  ;;  %s969_s15 = scalar_lea.vmem %s1269_s28, 2048 }
  0x3d   : > { %756 = vmatprep.subr.mxu0 %v299_v1  ;;  %811 = vmatprep.subr.mxu1 %v299_v1  ;;  %v293_v8 = vld [vmem:[%s1198_s20 + $0x40] sm:$0xff]  ;;  %v292_v9 = vld [vmem:[%s1198_s20 + $0x38] sm:$0xff]  ;;  %v291_v10 = vld [vmem:[%s1198_s20 + $0x30] sm:$0xff]  ;;  %p970_p8 = scmp.ne.s32.totalorder %s1269_s28, %s969_s15  ;;  %s1059_s12 = smov [#allocation8]  }
  0x3e   : > { %757 = vmatpush3.msra.mxu0 %v299_v1  ;;  %827 = vmatpush3.msra.mxu1 %v299_v1  ;;  %v290_v11 = vld [vmem:[%s1198_s20 + $0x28] sm:$0xff]  ;;  %v289_v12 = vld [vmem:[%s1198_s20 + $0x20] sm:$0xff]  ;;  %v288_v13 = vld [vmem:[%s1198_s20 + $0x18] sm:$0xff]  ;;  %s973_s16 = sshll.u32 %s1059_s12, 4  ;;  %s974_s16 = int_to_ptr.vmem [resolvable:$false] %s973_s16 }
  0x3f   : > { %758 = vmatprep.subr.mxu0 %v298_v2  ;;  %812 = vmatprep.subr.mxu1 %v298_v2  ;;  %v287_v14 = vld [vmem:[%s1198_s20 + $0x10] sm:$0xff]  ;;  %v286_v15 = vld [vmem:[%s1198_s20 + $0x8] sm:$0xff]  ;;  %v285_v16 = vld [vmem:[%s1198_s20] sm:$0xff]  ;;  %p971_p0 = pnand %p970_p8, %p1128_p9  ;;  %s975_s30 = scalar_lea.vmem %s974_s16, 4096 }
  0x40   : > { %759 = vmatpush3.msra.mxu0 %v298_v2  ;;  %786 = vmatprep.mubr.f32.mxu0 %v269_v4  ;;  %v270_v17 = vld [vmem:[%s1206_s18 + $0x8] sm:$0xff]  ;;  %v271_v18 = vld [vmem:[%s1206_s18 + $0x10] sm:$0xff]  ;;  %v277_v19 = vld [vmem:[%s1206_s18 + $0x40] sm:$0xff]  ;;  %p976_p5 = scmp.lt.s32.totalorder %s1269_s28, %s974_s16  ;;  %p977_p6 = scmp.lt.s32.totalorder %s975_s30, %s969_s15 }
  0x41   : > { %760 = vmatprep.subr.mxu0 %v297_v3  ;;  %828 = vmatpush3.msra.mxu1 %v298_v2  ;;  %v278_v20 = vld [vmem:[%s1206_s18 + $0x48] sm:$0xff]  ;;  %v279_v21 = vld [vmem:[%s1206_s18 + $0x50] sm:$0xff]  ;;  %v272_v22 = vld [vmem:[%s1206_s18 + $0x18] sm:$0xff]  ;;  %p972_p2 = pneg %p971_p0 }
  0x42   : > { %761 = vmatpush3.msra.mxu0 %v297_v3  ;;  %813 = vmatprep.subr.mxu1 %v297_v3  ;;  %v273_v23 = vld [vmem:[%s1206_s18 + $0x20] sm:$0xff]  ;;  %v280_v24 = vld [vmem:[%s1206_s18 + $0x58] sm:$0xff]  ;;  %v274_v26 = vld [vmem:[%s1206_s18 + $0x28] sm:$0xff]  ;;  %p978_p4 = por %p977_p6, %p976_p5 }
  0x43   : > { %762 = vmatprep.subr.mxu0 %v296_v5  ;;  %829 = vmatpush3.msra.mxu1 %v297_v3  ;;  %v281_v25 = vld [vmem:[%s1206_s18 + $0x60] sm:$0xff]  ;;  %v275_v27 = vld [vmem:[%s1206_s18 + $0x30] sm:$0xff]  ;;  %v282_v28 = vld [vmem:[%s1206_s18 + $0x68] sm:$0xff] }
  0x44   : > { %763 = vmatpush3.msra.mxu0 %v296_v5  ;;  %814 = vmatprep.subr.mxu1 %v296_v5  ;;  %v283_v29 = vld [vmem:[%s1206_s18 + $0x70] sm:$0xff]  ;;  %v276_v30 = vld [vmem:[%s1206_s18 + $0x38] sm:$0xff]  ;;  %p979_p7 = pnand %p978_p4, %p972_p2 }
  0x45   : > { %764 = vmatprep.subr.mxu0 %v295_v6  ;;  %830 = vmatpush3.msra.mxu1 %v296_v5  ;;  %v284_v31 = vld [vmem:[%s1206_s18 + $0x78] sm:$0xff] }
  0x46   : > { %765 = vmatpush3.msra.mxu0 %v295_v6  ;;  %815 = vmatprep.subr.mxu1 %v295_v6 }
  0x47   : > { %766 = vmatprep.subr.mxu0 %v294_v7  ;;  %831 = vmatpush3.msra.mxu1 %v295_v6 }
  0x48   : > { %767 = vmatpush3.msra.mxu0 %v294_v7  ;;  %816 = vmatprep.subr.mxu1 %v294_v7 }
  0x49   : > { %768 = vmatprep.subr.mxu0 %v293_v8  ;;  %832 = vmatpush3.msra.mxu1 %v294_v7 }
  0x4a   : > { %769 = vmatpush3.msra.mxu0 %v293_v8  ;;  %817 = vmatprep.subr.mxu1 %v293_v8 }
  0x4b   : > { %770 = vmatprep.subr.mxu0 %v292_v9  ;;  %833 = vmatpush3.msra.mxu1 %v293_v8 }
  0x4c   : > { %771 = vmatpush3.msra.mxu0 %v292_v9  ;;  %818 = vmatprep.subr.mxu1 %v292_v9 }
  0x4d   : > { %772 = vmatprep.subr.mxu0 %v291_v10  ;;  %834 = vmatpush3.msra.mxu1 %v292_v9 }
  0x4e   : > { %773 = vmatpush3.msra.mxu0 %v291_v10  ;;  %819 = vmatprep.subr.mxu1 %v291_v10 }
  0x4f   : > { %774 = vmatprep.subr.mxu0 %v290_v11  ;;  %835 = vmatpush3.msra.mxu1 %v291_v10 }
  0x50   : > { %775 = vmatpush3.msra.mxu0 %v290_v11  ;;  %820 = vmatprep.subr.mxu1 %v290_v11 }
  0x51   : > { %776 = vmatprep.subr.mxu0 %v289_v12  ;;  %836 = vmatpush3.msra.mxu1 %v290_v11 }
  0x52   : > { %777 = vmatpush3.msra.mxu0 %v289_v12  ;;  %821 = vmatprep.subr.mxu1 %v289_v12 }
  0x53   : > { %778 = vmatprep.subr.mxu0 %v288_v13  ;;  %837 = vmatpush3.msra.mxu1 %v289_v12 }
  0x54   : > { %779 = vmatpush3.msra.mxu0 %v288_v13  ;;  %822 = vmatprep.subr.mxu1 %v288_v13 }
  0x55   : > { %780 = vmatprep.subr.mxu0 %v287_v14  ;;  %838 = vmatpush3.msra.mxu1 %v288_v13 }
  0x56   : > { %781 = vmatpush3.msra.mxu0 %v287_v14  ;;  %823 = vmatprep.subr.mxu1 %v287_v14 }
  0x57   : > { %782 = vmatprep.subr.mxu0 %v286_v15  ;;  %839 = vmatpush3.msra.mxu1 %v287_v14 }
  0x58   : > { %783 = vmatpush3.msra.mxu0 %v286_v15  ;;  %824 = vmatprep.subr.mxu1 %v286_v15 }
  0x59   : > { %784 = vmatprep.subr.mxu0 %v285_v16  ;;  %840 = vmatpush3.msra.mxu1 %v286_v15 }
  0x5a   : > { %785 = vmatpush3.msra.mxu0 %v285_v16  ;;  %825 = vmatprep.subr.mxu1 %v285_v16 }
  0x5b   : > { %787 = vmatmul.mubr.f32.vlgmr.msra.gmra.mxu0 %v270_v17  ;;  %841 = vmatpush3.msra.mxu1 %v285_v16 }
  0x5c   : > { %789 = vmatprep.mubr.f32.mxu0 %v271_v18  ;;  %798 = vmatprep.mubr.f32.mxu1 %v277_v19 }
  0x5d   : > { %799 = vmatmul.mubr.f32.vlgmr.msra.gmra.mxu1 %v278_v20 }
  0x5e   : > { %801 = vmatprep.mubr.f32.mxu1 %v279_v21 }
  0x5f   : > { %790 = vmatmul.mubr.f32.gmra.mxu0 %v272_v22 }
  0x60   : > { %792 = vmatprep.mubr.f32.mxu0 %v273_v23 }
  0x61   : > { %802 = vmatmul.mubr.f32.gmra.mxu1 %v280_v24 }
  0x62   : > { %804 = vmatprep.mubr.f32.mxu1 %v281_v25 }
  0x63   : > { %793 = vmatmul.mubr.f32.gmra.mxu0 %v274_v26 }
  0x64   : > { %795 = vmatprep.mubr.f32.mxu0 %v275_v27 }
  0x65   : > { %805 = vmatmul.mubr.f32.gmra.mxu1 %v282_v28 }
  0x66   : > { %807 = vmatprep.mubr.f32.mxu1 %v283_v29 }
  0x67   : > { %796 = vmatmul.mubr.f32.gmra.mxu0 %v276_v30 }
  0x69   : > { %808 = vmatmul.mubr.f32.gmra.mxu1 %v284_v31 }
 0x11b   : > { %v788_v32 = vpop.f32.mrf.mxu0 }
 0x11d   : > { %v383_v33 = vpop.f32.mrf.mxu0  ;;  %v800_v40 = vpop.f32.mrf.mxu1 }
 0x11e   : > { %513 = vxpose.xlu0.b32.start [1/16] %v383_v33, 128 }
 0x11f   : > { %v791_v34 = vpop.f32.mrf.mxu0  ;;  %v423_v41 = vpop.f32.mrf.mxu1 }
 0x121   : > { %v393_v35 = vpop.f32.mrf.mxu0  ;;  %v803_v42 = vpop.f32.mrf.mxu1 }
 0x122   : > { %514 = vxpose.xlu0.b32.cont [2/16] %v788_v32, 128 }
 0x123   : > { %v794_v36 = vpop.f32.mrf.mxu0  ;;  %v433_v43 = vpop.f32.mrf.mxu1 }
 0x125   : > { %v403_v37 = vpop.f32.mrf.mxu0  ;;  %v806_v44 = vpop.f32.mrf.mxu1 }
 0x126   : > { %515 = vxpose.xlu0.b32.cont [3/16] %v393_v35, 128 }
 0x127   : > { %v797_v38 = vpop.f32.mrf.mxu0  ;;  %v443_v45 = vpop.f32.mrf.mxu1 }
 0x129   : > { %v413_v39 = vpop.f32.mrf.mxu0  ;;  %v809_v46 = vpop.f32.mrf.mxu1 }
 0x12a   : > { %516 = vxpose.xlu0.b32.cont [4/16] %v791_v34, 128 }
 0x12b   : > { %v453_v47 = vpop.f32.mrf.mxu1 }
 0x12e   : > { %517 = vxpose.xlu0.b32.cont [5/16] %v403_v37, 128 }
 0x132   : > { %518 = vxpose.xlu0.b32.cont [6/16] %v794_v36, 128 }
 0x136   : > { %519 = vxpose.xlu0.b32.cont [7/16] %v413_v39, 128 }
 0x13a   : > { %520 = vxpose.xlu0.b32.cont [8/16] %v797_v38, 128 }
 0x13e   : > { %521 = vxpose.xlu0.b32.cont [9/16] %v423_v41, 128 }
 0x142   : > { %522 = vxpose.xlu0.b32.cont [10/16] %v800_v40, 128 }
 0x146   : > { %523 = vxpose.xlu0.b32.cont [11/16] %v433_v43, 128 }
 0x14a   : > { %524 = vxpose.xlu0.b32.cont [12/16] %v803_v42, 128 }
 0x14e   : > { %525 = vxpose.xlu0.b32.cont [13/16] %v443_v45, 128 }
 0x152   : > { %526 = vxpose.xlu0.b32.cont [14/16] %v806_v44, 128 }
 0x156   : > { %527 = vxpose.xlu0.b32.cont [15/16] %v453_v47, 128 }
 0x15a   : > { %528 = vxpose.xlu0.b32.end [16/16] %v809_v46, 128 }
 0x19a   : > { %v529_v48 = vpop.trf.xlu0 }
 0x19b   : > { %545 = vst [vmem:[%s1245_s21] sm:$0xff] %v529_v48 }
 0x19e   : > { %v530_v49 = vpop.trf.xlu0 }
 0x19f   : > { %546 = vst [vmem:[%s1245_s21 + $0x8] sm:$0xff] %v530_v49 }
 0x1a2   : > { %v531_v50 = vpop.trf.xlu0 }
 0x1a3   : > { %547 = vst [vmem:[%s1245_s21 + $0x10] sm:$0xff] %v531_v50 }
 0x1a6   : > { %v532_v51 = vpop.trf.xlu0 }
 0x1a7   : > { %548 = vst [vmem:[%s1245_s21 + $0x18] sm:$0xff] %v532_v51 }
 0x1aa   : > { %v533_v52 = vpop.trf.xlu0 }
 0x1ab   : > { %549 = vst [vmem:[%s1245_s21 + $0x20] sm:$0xff] %v533_v52 }
 0x1ae   : > { %v534_v53 = vpop.trf.xlu0 }
 0x1af   : > { %550 = vst [vmem:[%s1245_s21 + $0x28] sm:$0xff] %v534_v53 }
 0x1b2   : > { %v535_v54 = vpop.trf.xlu0 }
 0x1b3   : > { %551 = vst [vmem:[%s1245_s21 + $0x30] sm:$0xff] %v535_v54 }
 0x1b6   : > { %v536_v55 = vpop.trf.xlu0 }
 0x1b7   : > { %552 = vst [vmem:[%s1245_s21 + $0x38] sm:$0xff] %v536_v55 }
 0x1ba   : > { %v537_v56 = vpop.trf.xlu0 }
 0x1bb   : > { %553 = vst [vmem:[%s1245_s21 + $0x40] sm:$0xff] %v537_v56 }
 0x1be   : > { %v538_v57 = vpop.trf.xlu0 }
 0x1bf   : > { %554 = vst [vmem:[%s1245_s21 + $0x48] sm:$0xff] %v538_v57 }
 0x1c2   : > { %v539_v58 = vpop.trf.xlu0 }
 0x1c3   : > { %555 = vst [vmem:[%s1245_s21 + $0x50] sm:$0xff] %v539_v58 }
 0x1c6   : > { %v540_v59 = vpop.trf.xlu0 }
 0x1c7   : > { %556 = vst [vmem:[%s1245_s21 + $0x58] sm:$0xff] %v540_v59 }
 0x1ca   : > { %v541_v60 = vpop.trf.xlu0 }
 0x1cb   : > { %557 = vst [vmem:[%s1245_s21 + $0x60] sm:$0xff] %v541_v60 }
 0x1ce   : > { %v542_v61 = vpop.trf.xlu0 }
 0x1cf   : > { %558 = vst [vmem:[%s1245_s21 + $0x68] sm:$0xff] %v542_v61 }
 0x1d2   : > { %v543_v62 = vpop.trf.xlu0 }
 0x1d3   : > { %559 = vst [vmem:[%s1245_s21 + $0x70] sm:$0xff] %v543_v62 }
 0x1d6   : > { %v544_v63 = vpop.trf.xlu0 }
 0x1d7   : > { %560 = vst [vmem:[%s1245_s21 + $0x78] sm:$0xff] %v544_v63 }
 0x1d8   : > { %982 = shalt.err (!%p979_p7)
}
 0x1d9   : > { %s983_s4 = scalar_lea.hbm %s1267_s7, 2048  ;;  %s987_s6 = scalar_lea.hbm %s1320_s2, 4096 }
 0x1da   : > { %p984_p10 = scmp.ne.s32.totalorder %s1267_s7, %s983_s4  ;;  %p988_p3 = scmp.lt.s32.totalorder %s1267_s7, %s1320_s2 }
 0x1db   : > { %p989_p8 = scmp.lt.s32.totalorder %s987_s6, %s983_s4 }
 0x1dc   : > { %p985_p1 = pnand %p984_p10, %p1128_p9 }
 0x1dd   : > { %p990_p0 = por %p989_p8, %p988_p3 }
 0x1de   : > { %p986_p13 = pneg %p985_p1 }
 0x1e0   : > { %p991_p2 = pnand %p990_p0, %p986_p13 }
 0x1e2   : > { %994 = shalt.err (!%p991_p2)
}
 0x1e3   : > { %s1060_s18 = smov 128   ;;  %s1061_s21 = smov 8  }
 0x1e4   : > { %846 = dma.vmem_to_hbm [thread:$0]  (%p1128_p9), %s1269_s28, 2048, %s1267_s7, %s562_s8, %s1060_s18, %s1060_s18, %s1061_s21  }
 0x1e5 PF: > { %s593_s19 = sand.u32 1, %s1033_s9   ;;  %p856_p5 = pnand %p703_p12, %p1135_p11 }
 0x1e6   : > { %s594_s29 = scalar_lea.sflag [#allocation5], %s593_s19 }
 0x1e7   : > { %p857_p6 = pneg %p856_p5 }
 0x1e9   : > { %1028 = dma.done.wait (%p857_p6), %s594_s29, 2048  }
 0x1ea   : > { %1030 = vsyncadd (%p857_p6), %s594_s29, 4294965248  ;;  %s21_s14 = sadd.s32 1, %s1053_s14   ;;  %s1327_s9 = smov %s1037_s10 }
 0x1eb   : > { %p18_p4 = scmp.ge.s32.totalorder %s21_s14, 4   ;;  %s1328_s10 = smov %s1041_s11 }
 0x1ec   : > { %s1329_s11 = smov %s1133_s23  ;;  %s1330_s12 = smov %s1049_s13 }
 0x1ed   : > { %s1331_s13 = smov %s1333_s17  ;;  %20 = sbr.rel (!%p18_p4) target bundleno = 8 (0x8), region = 94 }
 0x1f2   :  { %599 = vsyncpa [#allocation4], 1 }
 0x1f3   :  { %601 = vsyncpa [#allocation4 + $0x1], 1 }
 0x1f4   :  { %602 = vsyncpa [#allocation7], 1 }
 0x1f5   :  { %604 = vsyncpa [#allocation7 + $0x1], 1 }
 0x1f6   :  { %605 = vsyncpa [#allocation5], 1 }
 0x1f7   :  { %607 = vsyncpa [#allocation5 + $0x1], 1 }

</bundles_post_ra>
